<compile_context>
chip_gen: v7x
topology: tpu7x:2x2x1
jax: 0.10.0
libtpu: 0.0.40
codegen_flags: <defaults>
</compile_context>

<pallas_src>
import functools

import jax
import jax.numpy as jnp
import numpy as np
from jax.experimental import pallas as pl
from jax.experimental.pallas import tpu as pltpu

_BF16 = jnp.bfloat16
_F32 = jnp.float32

# Tap order matches HWIO weight layout: t = (dy+1)*3 + (dx+1).
_TAPS = tuple((dy, dx) for dy in (-1, 0, 1) for dx in (-1, 0, 1))


def _flat(b, y, x, h, w):
    return (b * h + y) * w + x


# ----------------------------------------------------------------------------
# One-time calibration of pltpu.roll direction (makes the shift sign robust).
# ----------------------------------------------------------------------------
@functools.lru_cache(maxsize=None)
def _roll_is_np_style():
    """True iff pltpu.roll matches np.roll: roll(x, 1)[i] == x[i - 1]."""
    def kern(x_ref, o_ref):
        o_ref[...] = pltpu.roll(x_ref[...], 1, axis=1)

    x = jax.lax.broadcasted_iota(jnp.float32, (8, 128), 1)
    out = pl.pallas_call(
        kern, out_shape=jax.ShapeDtypeStruct((8, 128), jnp.float32))(x)
    return bool(out[0, 0] == 127.0)


def _shift_for(d, size, np_style):
    """Roll 'shift' such that rolled[m] == x[(m + d) % size]."""
    dd = d % size
    if dd == 0:
        return 0
    return (size - dd) if np_style else dd


# ----------------------------------------------------------------------------
# Structure constants: boundary masks (roll epilogue), tiny gather matrices
# for the two deepest levels, pooling compaction / selection, upsample,
# per-image mean.  Built once per (B, H, W) with numpy, cached on device.
# ----------------------------------------------------------------------------
@functools.lru_cache(maxsize=None)
def _structure_np(B, H, W):
    h1, w1 = H // 2, W // 2       # level 1
    h2, w2 = H // 4, W // 4       # level 2
    h3, w3 = H // 8, W // 8       # level 3 (bottleneck)

    def masks(h, w):
        m = np.zeros((9, 1, B * h * w), np.float32)
        for t, (dy, dx) in enumerate(_TAPS):
            for b in range(B):
                for y in range(h):
                    for x in range(w):
                        if 0 <= y + dy < h and 0 <= x + dx < w:
                            m[t, 0, _flat(b, y, x, h, w)] = 1.0
        return m

    def gathers(h, w):
        S = B * h * w
        g = np.zeros((9, S, S), np.float32)
        for t, (dy, dx) in enumerate(_TAPS):
            for b in range(B):
                for y in range(h):
                    yi = y + dy
                    if not 0 <= yi < h:
                        continue
                    for x in range(w):
                        xi = x + dx
                        if not 0 <= xi < w:
                            continue
                        g[t, _flat(b, yi, xi, h, w), _flat(b, y, x, h, w)] = 1.0
        return g

    def compact(h, w):
        ho, wo = h // 2, w // 2
        c = np.zeros((B * h * w, B * ho * wo), np.float32)
        for b in range(B):
            for yo in range(ho):
                for xo in range(wo):
                    c[_flat(b, 2 * yo, 2 * xo, h, w),
                      _flat(b, yo, xo, ho, wo)] = 1.0
        return c

    def pool_sel(h, w):
        ho, wo = h // 2, w // 2
        p = np.zeros((4, B * h * w, B * ho * wo), np.float32)
        for k, (dy, dx) in enumerate(((0, 0), (0, 1), (1, 0), (1, 1))):
            for b in range(B):
                for yo in range(ho):
                    for xo in range(wo):
                        p[k, _flat(b, 2 * yo + dy, 2 * xo + dx, h, w),
                          _flat(b, yo, xo, ho, wo)] = 1.0
        return p

    def up(h, w):
        ho, wo = 2 * h, 2 * w
        u = np.zeros((B * h * w, B * ho * wo), np.float32)
        for b in range(B):
            for yo in range(ho):
                for xo in range(wo):
                    u[_flat(b, yo // 2, xo // 2, h, w),
                      _flat(b, yo, xo, ho, wo)] = 1.0
        return u

    mavg = np.zeros((B * h3 * w3, B), np.float32)
    for b in range(B):
        for y in range(h3):
            for x in range(w3):
                mavg[_flat(b, y, x, h3, w3), b] = 1.0 / (h3 * w3)

    return dict(
        mask0=masks(H, W), mask1=masks(h1, w1),
        g2=gathers(h2, w2), g3=gathers(h3, w3),
        c0=compact(H, W), c1=compact(h1, w1), p2=pool_sel(h2, w2),
        u3=up(h3, w3), u2=up(h2, w2), u1=up(h1, w1),
        mavg=mavg,
    )


@functools.lru_cache(maxsize=None)
def _structure_consts(B, H, W):
    """Device-resident structure constants, built ONCE per (B, H, W)."""
    npc = _structure_np(B, H, W)
    out = {}
    for k, v in npc.items():
        dt = _F32 if k.startswith("mask") else _BF16
        out[k] = jnp.asarray(v, dt)
    return out


# ----------------------------------------------------------------------------
# Weight prep
# ----------------------------------------------------------------------------
def _stack_w(w):
    """(3,3,Cin,Cout) HWIO -> stacked (9*Cout, Cin) bf16 (tap-major rows)."""
    cin, cout = w.shape[2], w.shape[3]
    return (jnp.transpose(w.reshape(9, cin, cout), (0, 2, 1))
            .reshape(9 * cout, cin).astype(_BF16))


def _col_b(b):
    return jnp.reshape(b, (-1, 1)).astype(_F32)


def _flops_estimate(B, H, W):
    S = [B * H * W, B * H * W // 4, B * H * W // 16, B * H * W // 64]
    macs = 0
    # stacked-tap channel-mixing matmuls: (level, cin, cout)
    for lvl, cin, cout in [(0, 4, 8), (1, 8, 16), (2, 16, 32), (3, 32, 32),
                           (2, 64, 32), (1, 48, 16), (0, 24, 8), (0, 8, 1)]:
        macs += 9 * cin * cout * S[lvl]
    # spatial gather matmuls kept only at the two deepest levels
    macs += 9 * 32 * S[2] * S[2] * 2 + 9 * 32 * S[3] * S[3]
    # max-pool compaction / selection matmuls
    macs += 8 * S[0] * S[1] + 16 * S[1] * S[2] + 4 * 32 * S[2] * S[3]
    # nearest-upsample matmuls
    macs += 32 * S[3] * S[2] + 32 * S[2] * S[1] + 16 * S[1] * S[0]
    # tx_loc head
    macs += 32 * S[3] * B + 2 * 32 * B
    return 2 * macs


# ----------------------------------------------------------------------------
# Fused forward kernel wrapper.  Activations are (C, S) with S = B*H*W on the
# lane axis (lane-dense big stores/loads).
# ----------------------------------------------------------------------------
def tlp_autoencoder_forward(x_nchw, p):
    B, Cin, H, W = x_nchw.shape
    S0 = B * H * W
    S1, S2, S3 = S0 // 4, S0 // 16, S0 // 64
    W0, W1 = W, W // 2
    np_style = _roll_is_np_style()
    c = _structure_consts(B, H, W)

    def shift0(d):
        return _shift_for(d, S0, np_style)

    def shift1(d):
        return _shift_for(d, S1, np_style)

    # NCHW -> (C, B*H*W): spatial (b, y, x) flattened on the lane axis.
    x_cs = jnp.transpose(x_nchw, (1, 0, 2, 3)).reshape(Cin, S0).astype(_BF16)

    # Output channel counts (static under jit).
    co1 = p["enc1"][0].shape[3]
    co2 = p["enc2"][0].shape[3]
    co3 = p["enc3"][0].shape[3]
    co4 = p["enc4"][0].shape[3]
    cd3 = p["dec3"][0].shape[3]
    cd2 = p["dec2"][0].shape[3]
    cd1 = p["dec1"][0].shape[3]
    cin_o = p["out"][0].shape[2]

    e1w, e1b = _stack_w(p["enc1"][0]), _col_b(p["enc1"][1])
    e2w, e2b = _stack_w(p["enc2"][0]), _col_b(p["enc2"][1])
    e3w, e3b = _stack_w(p["enc3"][0]), _col_b(p["enc3"][1])
    e4w, e4b = _stack_w(p["enc4"][0]), _col_b(p["enc4"][1])
    d3w, d3b = _stack_w(p["dec3"][0]), _col_b(p["dec3"][1])
    d2w, d2b = _stack_w(p["dec2"][0]), _col_b(p["dec2"][1])
    d1w, d1b = _stack_w(p["dec1"][0]), _col_b(p["dec1"][1])

    # Final 8->1 conv stays on the VPU: per-tap (Cin, 1) weight columns (f32).
    oww = p["out"][0].reshape(9, cin_o, 1).reshape(9 * cin_o, 1).astype(_F32)
    owb = jnp.reshape(p["out"][1], (1, 1)).astype(_F32)

    locw = p["loc_w"].T.astype(_BF16)                 # (2, 32)
    locb = p["loc_b"].T.astype(_F32)                  # (2, 1)

    def kernel(x_ref,
               e1w_r, e1b_r, e2w_r, e2b_r, e3w_r, e3b_r, e4w_r, e4b_r,
               locw_r, locb_r,
               d3w_r, d3b_r, d2w_r, d2b_r, d1w_r, d1b_r,
               oww_r, owb_r,
               mask0_r, mask1_r, g2_r, g3_r,
               c0_r, c1_r, p2_r,
               u3_r, u2_r, u1_r, mavg_r,
               recon_ref, tx_ref):

        def conv_roll(a, w_r, b_r, mask_r, wdim, shift, cout, relu=True):
            # One stacked channel-mixing dot, then per-tap roll+mask (XLU/VPU).
            ct_all = jnp.dot(w_r[...], a.astype(_BF16),
                             preferred_element_type=_F32)   # (9*Cout, S)
            acc = None
            for t, (dy, dx) in enumerate(_TAPS):
                ct = ct_all[t * cout:(t + 1) * cout, :]
                d = dy * wdim + dx
                if d != 0:
                    ct = pltpu.roll(ct, shift(d), axis=1)
                if (dy, dx) != (0, 0):
                    ct = ct * mask_r[t]
                acc = ct if acc is None else acc + ct
            acc = acc + b_r[...]
            return jnp.maximum(acc, 0.0) if relu else acc

        def conv_gather(a, w_r, b_r, g_r, cout, relu=True):
            # Deepest levels (S = 32 / 8): stacked dot + tiny gather matmuls.
            ct_all = jnp.dot(w_r[...], a.astype(_BF16),
                             preferred_element_type=_F32)
            acc = None
            for t in range(9):
                ct = ct_all[t * cout:(t + 1) * cout, :].astype(_BF16)
                gat = jnp.dot(ct, g_r[t], preferred_element_type=_F32)
                acc = gat if acc is None else acc + gat
            acc = acc + b_r[...]
            return jnp.maximum(acc, 0.0) if relu else acc

        def pool_roll(a, c_r, wdim, shift):
            # 2x2 max pool: windowed max via rolls, then ONE compaction dot.
            r1 = pltpu.roll(a, shift(1), axis=1)
            rw = pltpu.roll(a, shift(wdim), axis=1)
            rw1 = pltpu.roll(a, shift(wdim + 1), axis=1)
            m4 = jnp.maximum(jnp.maximum(a, r1), jnp.maximum(rw, rw1))
            return jnp.dot(m4.astype(_BF16), c_r[...],
                           preferred_element_type=_F32)

        def pool_small(a, p_r):
            ab = a.astype(_BF16)
            m = None
            for k in range(4):
                gk = jnp.dot(ab, p_r[k], preferred_element_type=_F32)
                m = gk if m is None else jnp.maximum(m, gk)
            return m

        def upsample(a, u_r):
            return jnp.dot(a.astype(_BF16), u_r[...],
                           preferred_element_type=_F32)

        x = x_ref[...]                                          # (Cin, S0)

        # ---- Encoder ----
        s1 = conv_roll(x, e1w_r, e1b_r, mask0_r, W0, shift0, co1)   # (8,  S0)
        a = pool_roll(s1, c0_r, W0, shift0)                         # (8,  S1)
        s2 = conv_roll(a, e2w_r, e2b_r, mask1_r, W1, shift1, co2)   # (16, S1)
        a = pool_roll(s2, c1_r, W1, shift1)                         # (16, S2)
        s3 = conv_gather(a, e3w_r, e3b_r, g2_r, co3)                # (32, S2)
        a = pool_small(s3, p2_r)                                    # (32, S3)
        z = conv_gather(a, e4w_r, e4b_r, g3_r, co4)                 # (32, S3)

        # ---- tx_loc head: per-image mean pool + linear -> (2, B) ----
        zm = jnp.dot(z.astype(_BF16), mavg_r[...],
                     preferred_element_type=_F32)                   # (32, B)
        tx_ref[...] = (jnp.dot(locw_r[...], zm.astype(_BF16),
                               preferred_element_type=_F32) + locb_r[...])

        # ---- Decoder (skip concat fused on the sublane axis) ----
        y = conv_gather(jnp.concatenate([upsample(z, u3_r), s3], axis=0),
                        d3w_r, d3b_r, g2_r, cd3)                    # (32, S2)
        y = conv_roll(jnp.concatenate([upsample(y, u2_r), s2], axis=0),
                      d2w_r, d2b_r, mask1_r, W1, shift1, cd2)       # (16, S1)
        y = conv_roll(jnp.concatenate([upsample(y, u1_r), s1], axis=0),
                      d1w_r, d1b_r, mask0_r, W0, shift0, cd1)       # (8,  S0)

        # ---- Final 8->1 conv entirely on the VPU/XLU ----
        acc8 = jnp.zeros_like(y)
        for t, (dy, dx) in enumerate(_TAPS):
            d = dy * W0 + dx
            yt = y if d == 0 else pltpu.roll(y, shift0(d), axis=1)
            if (dy, dx) != (0, 0):
                yt = yt * mask0_r[t]
            acc8 = acc8 + oww_r[t * cin_o:(t + 1) * cin_o, :] * yt
        recon_ref[...] = jnp.sum(acc8, axis=0, keepdims=True) + owb_r[...]

    args = (
        x_cs,
        e1w, e1b, e2w, e2b, e3w, e3b, e4w, e4b,
        locw, locb,
        d3w, d3b, d2w, d2b, d1w, d1b,
        oww, owb,
        c["mask0"], c["mask1"], c["g2"], c["g3"],
        c["c0"], c["c1"], c["p2"],
        c["u3"], c["u2"], c["u1"], c["mavg"],
    )

    vmem = pl.BlockSpec(memory_space=pltpu.MemorySpace.VMEM)
    bytes_accessed = int(
        sum(int(np.prod(a.shape)) * a.dtype.itemsize for a in args)
        + (S0 + 2 * B) * 4
    )

    recon_t, tx_t = pl.pallas_call(
        kernel,
        out_shape=(
            jax.ShapeDtypeStruct((1, S0), _F32),     # recon, lane-dense
            jax.ShapeDtypeStruct((2, B), _F32),      # tx_loc (transposed)
        ),
        in_specs=[vmem] * len(args),
        out_specs=(vmem, vmem),
        cost_estimate=pl.CostEstimate(
            flops=_flops_estimate(B, H, W),
            transcendentals=0,
            bytes_accessed=bytes_accessed,
        ),
    )(*args)

    recon = recon_t.reshape(B, H, W)[:, None, :, :]   # (B, 1, H, W)
    tx_loc = tx_t.T                                   # (B, 2)
    return recon, tx_loc


# ----------------------------------------------------------------------------
# Parameters (deterministic synthetic init, same structure as before)
# ----------------------------------------------------------------------------
def _conv_params(key, cin, cout):
    w = jax.random.normal(key, (3, 3, cin, cout), jnp.float32) / np.sqrt(9.0 * cin)
    b = jnp.zeros((cout,), jnp.float32)
    return w, b


def init_params(key):
    ks = jax.random.split(key, 9)
    return {
        "enc1": _conv_params(ks[0], 4, 8),
        "enc2": _conv_params(ks[1], 8, 16),
        "enc3": _conv_params(ks[2], 16, 32),
        "enc4": _conv_params(ks[3], 32, 32),
        "loc_w": jax.random.normal(ks[4], (32, 2), jnp.float32) / np.sqrt(32.0),
        "loc_b": jnp.zeros((1, 2), jnp.float32),
        "dec3": _conv_params(ks[5], 64, 32),
        "dec2": _conv_params(ks[6], 48, 16),
        "dec1": _conv_params(ks[7], 24, 8),
        "out": _conv_params(ks[8], 8, 1),
    }


# ----------------------------------------------------------------------------
# Pure-JAX f32 reference (numerical cross-check)
# ----------------------------------------------------------------------------
def _reference_forward(x_nchw, p):
    x = jnp.transpose(x_nchw, (0, 2, 3, 1))

    def conv(v, w, b, relu=True):
        o = jax.lax.conv_general_dilated(
            v, w, (1, 1), "SAME", dimension_numbers=("NHWC", "HWIO", "NHWC"))
        o = o + b
        return jnp.maximum(o, 0.0) if relu else o

    def pool(v):
        b_, h_, w_, c_ = v.shape
        return v.reshape(b_, h_ // 2, 2, w_ // 2, 2, c_).max(axis=(2, 4))

    def up(v):
        return jnp.repeat(jnp.repeat(v, 2, axis=1), 2, axis=2)

    s1 = conv(x, *p["enc1"]); d1 = pool(s1)
    s2 = conv(d1, *p["enc2"]); d2 = pool(s2)
    s3 = conv(d2, *p["enc3"]); d3 = pool(s3)
    z = conv(d3, *p["enc4"])
    B, h, w, cc = z.shape
    tx = z.reshape(B, h * w, cc).mean(axis=1) @ p["loc_w"] + p["loc_b"]
    y3 = conv(jnp.concatenate([up(z), s3], -1), *p["dec3"])
    y2 = conv(jnp.concatenate([up(y3), s2], -1), *p["dec2"])
    y1 = conv(jnp.concatenate([up(y2), s1], -1), *p["dec1"])
    rec = conv(y1, *p["out"], relu=False)
    return jnp.transpose(rec, (0, 3, 1, 2)), tx


if __name__ == "__main__":
    key = jax.random.PRNGKey(0)
    k_x, k_p = jax.random.split(key)
    x = jax.random.normal(k_x, (2, 4, 16, 16), jnp.float32)  # NCHW input
    params = init_params(k_p)

    _roll_is_np_style()   # calibrate roll direction once, outside jit

    fwd = jax.jit(tlp_autoencoder_forward)
    recon, tx_loc = fwd(x, params)
    jax.block_until_ready((recon, tx_loc))

    assert recon.shape == (2, 1, 16, 16) and recon.dtype == jnp.float32
    assert tx_loc.shape == (2, 2) and tx_loc.dtype == jnp.float32
    assert bool(jnp.all(jnp.isfinite(recon))) and bool(jnp.all(jnp.isfinite(tx_loc)))

    # Cross-check vs. a pure-JAX f32 reference.  Kernel uses bf16 MXU operands
    # with f32 accumulation (and a bf16-cast input), so allow a few percent.
    ref_recon, ref_tx = jax.jit(_reference_forward)(x, params)
    assert bool(jnp.allclose(recon, ref_recon, atol=5e-2, rtol=5e-2)), (
        float(jnp.max(jnp.abs(recon - ref_recon))))
    assert bool(jnp.allclose(tx_loc, ref_tx, atol=5e-2, rtol=5e-2)), (
        float(jnp.max(jnp.abs(tx_loc - ref_tx))))

    print("KERNEL_OK")
</pallas_src>

<mosaic_0001>
module attributes {stable_mosaic.version = 11 : i64} {
  func.func @kern(%arg0: memref<8x128xf32, #tpu.memory_space<vmem>>, %arg1: memref<8x128xf32, #tpu.memory_space<vmem>>) attributes {dimension_semantics = [], scalar_prefetch = 0 : i64, scratch_operands = 0 : i64, tpu.core_type = #tpu.core_type<tc>} {
    %c0 = arith.constant 0 : index
    %c0_0 = arith.constant 0 : index
    %0 = vector.load %arg0[%c0, %c0_0] : memref<8x128xf32, #tpu.memory_space<vmem>>, vector<8x128xf32>
    %c1_i32 = arith.constant 1 : i32
    %1 = tpu.dynamic_rotate %0 by %c1_i32 dim 1 : vector<8x128xf32>, i32 -> vector<8x128xf32>
    %c0_1 = arith.constant 0 : index
    %c0_2 = arith.constant 0 : index
    %2 = vector.load %arg1[%c0_1, %c0_2] : memref<8x128xf32, #tpu.memory_space<vmem>>, vector<8x128xf32>
    tpu.vector_store %arg1[%c0_1, %c0_2], %1 {strides = array<i32>} : memref<8x128xf32, #tpu.memory_space<vmem>>, vector<8x128xf32>,
    return
  }
}

</mosaic_0001>

<bundles_post_ra>
// kernel: tpu_custom_call.1
= control target key start
LH: loop header
LB: loop body
LE: loop exit
PB: predicated region body
PF: predicated region fallthrough
CT: control target
= control target key end

     0   :  { %6 = vsyncpa [#allocation3], 0  ;;  %s128_s0 = inlined_call_operand.hbm [shape: f32[8,128], index: 0, kind: input, shape index: {}]   ;;  %s129_s1 = inlined_call_operand.hbm [shape: f32[8,128], index: 1, kind: output, shape index: {}]  }
   0x1   :  { %7 = vsyncpa [#allocation4], 0  ;;  %s91_s6 = smov [#allocation2]   ;;  %s43_s10 = scalar_lea.hbm %s128_s0, 128 }
   0x2   :  { %s14_s7 = sshll.u32 %s91_s6, 4  ;;  %p44_p0 = scmp.ne.s32.totalorder %s128_s0, %s43_s10  ;;  %s15_s7 = int_to_ptr.vmem [resolvable:$true] %s14_s7 }
   0x3   :  { %p47_p1 = scmp.lt.u32.totalorder %s43_s10, %s128_s0 }
   0x5   :  { %p49_p2 = pnand %p47_p1, %p44_p0 }
   0x7   :  { %52 = shalt.err (!%p49_p2)
}
   0x8   :  { %s53_s15 = scalar_lea.vmem %s15_s7, 128  ;;  %p58_p4 = scmp.lt.s32.totalorder %s15_s7, %s15_s7 }
   0x9   :  { %p54_p3 = scmp.ne.s32.totalorder %s15_s7, %s53_s15  ;;  %p59_p5 = scmp.lt.s32.totalorder %s53_s15, %s53_s15 }
   0xb   :  { %p60_p6 = por %p59_p5, %p58_p4 }
   0xd   :  { %p61_p7 = pnand %p60_p6, %p54_p3 }
   0xf   :  { %64 = shalt.err (!%p61_p7)
}
  0x10   :  { %17 = dma.hbm_to_vmem [thread:$0]  %s128_s0, 128, %s15_s7, [#allocation3]  }
  0x11   :  { %87 = dma.done.wait [#allocation3], 128  }
  0x12   :  { %88 = vsyncadd [#allocation3], 4294967168  ;;  %v21_v0 = vld [vmem:[#allocation2] sm:$0xff]  ;;  %s92_s18 = smov 1   ;;  %s93_s19 = smov [#allocation5]  }
  0x13   :  { %22 = vrot.lane.b32.xlu0 %v21_v0, %s92_s18  ;;  %s31_s20 = sshll.u32 %s93_s19, 4  ;;  %s32_s20 = int_to_ptr.vmem [resolvable:$true] %s31_s20 }
  0x14   :  { %s65_s21 = scalar_lea.vmem %s32_s20, 128  ;;  %p70_p9 = scmp.lt.s32.totalorder %s32_s20, %s32_s20 }
  0x15   :  { %p66_p8 = scmp.ne.s32.totalorder %s32_s20, %s65_s21  ;;  %p71_p10 = scmp.lt.s32.totalorder %s65_s21, %s65_s21 }
  0x17   :  { %p72_p11 = por %p71_p10, %p70_p9 }
  0x19   :  { %p73_p12 = pnand %p72_p11, %p66_p8 }
  0x85   :  { %v23_v1 = vpop.permute.xlu0 %22 }
  0x86   :  { %24 = vst [vmem:[#allocation5] sm:$0xff] %v23_v1 }
  0x87   :  { %76 = shalt.err (!%p73_p12)
}
  0x88   :  { %s77_s0 = scalar_lea.hbm %s129_s1, 128 }
  0x89   :  { %p78_p13 = scmp.ne.s32.totalorder %s129_s1, %s77_s0  ;;  %p81_p0 = scmp.lt.u32.totalorder %s77_s0, %s129_s1 }
  0x8b   :  { %p83_p1 = pnand %p81_p0, %p78_p13 }
  0x8d   :  { %86 = shalt.err (!%p83_p1)
}
  0x8e   :  { %34 = dma.vmem_to_hbm [thread:$0]  %s32_s20, 128, %s129_s1, [#allocation4]  }
  0x8f   :  { %89 = dma.done.wait [#allocation4], 128  }
  0x90   :  { %90 = vsyncadd [#allocation4], 4294967168 }
  0x91   :  { %38 = vsyncpa [#allocation3], 1 }
  0x92   :  { %39 = vsyncpa [#allocation4], 1 }

</bundles_post_ra>
